<compile_context>
chip_gen: v7x
topology: tpu7x:2x2x1
jax: 0.10.0
libtpu: 0.0.40
codegen_flags: <defaults>
</compile_context>

<pallas_src>
import functools

import jax
import jax.numpy as jnp
from jax.experimental import pallas as pl
from jax.experimental.pallas import tpu as pltpu


def _round_up(x: int, m: int) -> int:
    return (x + m - 1) // m * m


# ---------------------------------------------------------------------------
# Kernel: fused (block-diagonal) matmul -> bias -> GELU -> matmul -> bias
# ---------------------------------------------------------------------------
def _fused_coder_kernel(x_ref, w1_ref, b1_ref, w2_ref, b2_ref, o_ref):
    x = x_ref[...]                                                # (TM, Din_pad) bf16
    # First projection: f32 accumulation on the MXU.
    h = jnp.dot(x, w1_ref[...], preferred_element_type=jnp.float32)
    h = h + b1_ref[...]                                           # f32 bias (1, H_pad)
    h = jax.nn.gelu(h)                                            # f32 elementwise (VPU/EUP)
    # Second projection: bf16 operands, f32 accumulation.
    h = h.astype(w2_ref.dtype)
    o = jnp.dot(h, w2_ref[...], preferred_element_type=jnp.float32)
    o_ref[...] = (o + b2_ref[...]).astype(o_ref.dtype)            # lane-dense store


# ---------------------------------------------------------------------------
# Wrapper: one pallas_call over a row grid
# ---------------------------------------------------------------------------
@functools.partial(jax.jit, static_argnames=("out_dim",))
def separable_latent_coder(x, w1p, b1p, w2p, b2p, *, out_dim):
    """x: (B, S, D_total). Packed block-diagonal params. Returns (B, S, out_dim)."""
    B, S, D = x.shape
    D_in_pad, H_pad = w1p.shape
    D_out_pad = w2p.shape[1]

    M = B * S
    TM = min(512, _round_up(M, 8))          # row tile (sweepable; >=512 for large M)
    M_pad = _round_up(M, TM)

    # Pad rows/cols with zeros and cast MXU operand to bf16.
    x2 = x.reshape(M, D).astype(jnp.bfloat16)
    x2p = jnp.zeros((M_pad, D_in_pad), jnp.bfloat16).at[:M, :D].set(x2)

    grid = (M_pad // TM,)

    flops = 2 * M_pad * (D_in_pad * H_pad + H_pad * D_out_pad)
    bytes_accessed = (
        M_pad * D_in_pad * 2            # x (bf16)
        + M_pad * D_out_pad * 4         # out (f32)
        + w1p.size * 2 + w2p.size * 2   # packed weights (bf16)
        + b1p.size * 4 + b2p.size * 4   # biases (f32)
    )
    cost = pl.CostEstimate(
        flops=flops, transcendentals=M_pad * H_pad, bytes_accessed=bytes_accessed
    )

    out = pl.pallas_call(
        _fused_coder_kernel,
        out_shape=jax.ShapeDtypeStruct((M_pad, D_out_pad), jnp.float32),
        grid=grid,
        in_specs=[
            pl.BlockSpec((TM, D_in_pad), lambda i: (i, 0)),       # streamed rows
            pl.BlockSpec((D_in_pad, H_pad), lambda i: (0, 0)),    # resident weights
            pl.BlockSpec((1, H_pad), lambda i: (0, 0)),           # resident bias
            pl.BlockSpec((H_pad, D_out_pad), lambda i: (0, 0)),   # resident weights
            pl.BlockSpec((1, D_out_pad), lambda i: (0, 0)),       # resident bias
        ],
        out_specs=pl.BlockSpec((TM, D_out_pad), lambda i: (i, 0)),
        compiler_params=pltpu.CompilerParams(
            dimension_semantics=("parallel",),                    # shards M across TCs on v7x
        ),
        cost_estimate=cost,
    )(x2p, w1p, b1p, w2p, b2p)

    return out[:M, :out_dim].reshape(B, S, out_dim)


# ---------------------------------------------------------------------------
# Parameter init + block-diagonal packing
# ---------------------------------------------------------------------------
def init_params(key, input_sizes, output_sizes, hidden):
    """Deterministic per-chunk MLP parameters (logical, unpacked)."""
    params = []
    for i, (din, dout) in enumerate(zip(input_sizes, output_sizes)):
        k1, k2 = jax.random.split(jax.random.fold_in(key, i))
        w1 = jax.random.normal(k1, (din, hidden), jnp.float32) / jnp.sqrt(din)
        b1 = jnp.zeros((hidden,), jnp.float32)
        w2 = jax.random.normal(k2, (hidden, dout), jnp.float32) / jnp.sqrt(hidden)
        b2 = jnp.zeros((dout,), jnp.float32)
        params.append((w1, b1, w2, b2))
    return params


def pack_params(params, input_sizes, output_sizes, hidden):
    """Block-diagonal pack + zero-pad to 128-lane multiples; weights in bf16."""
    n = len(input_sizes)
    D_in, H_tot, D_out = sum(input_sizes), n * hidden, sum(output_sizes)
    D_in_pad = _round_up(D_in, 128)
    H_pad = _round_up(H_tot, 128)
    D_out_pad = _round_up(D_out, 128)

    w1p = jnp.zeros((D_in_pad, H_pad), jnp.float32)
    b1p = jnp.zeros((1, H_pad), jnp.float32)
    w2p = jnp.zeros((H_pad, D_out_pad), jnp.float32)
    b2p = jnp.zeros((1, D_out_pad), jnp.float32)

    in_off = 0
    out_off = 0
    for i, ((w1, b1, w2, b2), din, dout) in enumerate(
        zip(params, input_sizes, output_sizes)
    ):
        h0 = i * hidden
        w1p = w1p.at[in_off:in_off + din, h0:h0 + hidden].set(w1)
        b1p = b1p.at[0, h0:h0 + hidden].set(b1)
        w2p = w2p.at[h0:h0 + hidden, out_off:out_off + dout].set(w2)
        b2p = b2p.at[0, out_off:out_off + dout].set(b2)
        in_off += din
        out_off += dout

    return w1p.astype(jnp.bfloat16), b1p, w2p.astype(jnp.bfloat16), b2p


# ---------------------------------------------------------------------------
# Pure-JAX reference (same precision policy: bf16 MXU operands, f32 elsewhere)
# ---------------------------------------------------------------------------
def reference(x, params, input_sizes):
    B, S, D = x.shape
    x2 = x.reshape(B * S, D)
    outs = []
    off = 0
    for (w1, b1, w2, b2), din in zip(params, input_sizes):
        xc = x2[:, off:off + din]
        off += din
        h = jnp.dot(xc.astype(jnp.bfloat16), w1.astype(jnp.bfloat16),
                    preferred_element_type=jnp.float32) + b1
        h = jax.nn.gelu(h)
        o = jnp.dot(h.astype(jnp.bfloat16), w2.astype(jnp.bfloat16),
                    preferred_element_type=jnp.float32) + b2
        outs.append(o)
    return jnp.concatenate(outs, axis=-1).reshape(B, S, -1)


if __name__ == "__main__":
    # Small shapes consistent with the module's forward contract.
    input_sizes = (4, 8, 4)      # per-chunk latent sizes (sum = 16)
    output_sizes = (8, 16, 8)    # per-chunk output sizes (sum = 32)
    hidden = 32
    B, S = 2, 8
    D_total = sum(input_sizes)
    D_out = sum(output_sizes)

    key = jax.random.PRNGKey(0)
    kx, kp = jax.random.split(key)
    x = jax.random.normal(kx, (B, S, D_total), jnp.float32)

    params = init_params(kp, input_sizes, output_sizes, hidden)
    w1p, b1p, w2p, b2p = pack_params(params, input_sizes, output_sizes, hidden)

    out = separable_latent_coder(x, w1p, b1p, w2p, b2p, out_dim=D_out)
    out = jax.block_until_ready(out)

    ref = reference(x, params, input_sizes)
    assert out.shape == (B, S, D_out), out.shape
    max_err = float(jnp.max(jnp.abs(out - ref)))
    assert jnp.allclose(out, ref, atol=1e-4, rtol=1e-4), max_err

    print("KERNEL_OK")
</pallas_src>

<mosaic_0001>
module attributes {stable_mosaic.version = 11 : i64} {
  func.func @_fused_coder_kernel(%arg0: i32, %arg1: memref<16x128xbf16, #tpu.memory_space<vmem>>, %arg2: memref<128x128xbf16, #tpu.memory_space<vmem>>, %arg3: memref<1x128xf32, #tpu.memory_space<vmem>>, %arg4: memref<128x128xbf16, #tpu.memory_space<vmem>>, %arg5: memref<1x128xf32, #tpu.memory_space<vmem>>, %arg6: memref<16x128xf32, #tpu.memory_space<vmem>>) attributes {dimension_semantics = [#tpu.dimension_semantics<parallel>], iteration_bounds = array<i64: 1>, scalar_prefetch = 0 : i64, scratch_operands = 0 : i64, tpu.core_type = #tpu.core_type<tc>, window_params = [{transform_indices = @transform_0, window_bounds = array<i64: 16, 128>}, {pipeline_mode = #tpu.pipeline_mode<synchronous>, transform_indices = @transform_1, window_bounds = array<i64: 128, 128>}, {pipeline_mode = #tpu.pipeline_mode<synchronous>, transform_indices = @transform_2, window_bounds = array<i64: 1, 128>}, {pipeline_mode = #tpu.pipeline_mode<synchronous>, transform_indices = @transform_3, window_bounds = array<i64: 128, 128>}, {pipeline_mode = #tpu.pipeline_mode<synchronous>, transform_indices = @transform_4, window_bounds = array<i64: 1, 128>}, {transform_indices = @transform_5, window_bounds = array<i64: 16, 128>}]} {
    %c0 = arith.constant 0 : index
    %c0_0 = arith.constant 0 : index
    %0 = vector.load %arg1[%c0, %c0_0] : memref<16x128xbf16, #tpu.memory_space<vmem>>, vector<16x128xbf16>
    %c0_1 = arith.constant 0 : index
    %c0_2 = arith.constant 0 : index
    %1 = vector.load %arg2[%c0_1, %c0_2] : memref<128x128xbf16, #tpu.memory_space<vmem>>, vector<128x128xbf16>
    %cst = arith.constant dense<0.000000e+00> : vector<16x128xf32>
    %2 = tpu.matmul %0, %1, %cst {dimension_numbers = #tpu.dot_dimension_numbers<[1], [0], [0], [1], [0, 0, 1, 1], [], []>} : vector<16x128xbf16>, vector<128x128xbf16>, vector<16x128xf32> -> vector<16x128xf32>
    %c0_3 = arith.constant 0 : index
    %c0_4 = arith.constant 0 : index
    %3 = vector.load %arg3[%c0_3, %c0_4] : memref<1x128xf32, #tpu.memory_space<vmem>>, vector<1x128xf32>
    %4 = vector.broadcast %3 : vector<1x128xf32> to vector<16x128xf32>
    %5 = arith.addf %2, %4 : vector<16x128xf32>
    %6 = arith.mulf %5, %5 : vector<16x128xf32>
    %7 = arith.mulf %5, %6 : vector<16x128xf32>
    %cst_5 = arith.constant 4.471500e-02 : f32
    %8 = vector.broadcast %cst_5 : f32 to vector<16x128xf32>
    %9 = arith.mulf %8, %7 : vector<16x128xf32>
    %10 = arith.addf %5, %9 : vector<16x128xf32>
    %cst_6 = arith.constant 0.797884583 : f32
    %11 = vector.broadcast %cst_6 : f32 to vector<16x128xf32>
    %12 = arith.mulf %11, %10 : vector<16x128xf32>
    %13 = math.tanh %12 : vector<16x128xf32>
    %cst_7 = arith.constant 1.000000e+00 : f32
    %14 = vector.broadcast %cst_7 : f32 to vector<16x128xf32>
    %15 = arith.addf %14, %13 : vector<16x128xf32>
    %cst_8 = arith.constant 5.000000e-01 : f32
    %16 = vector.broadcast %cst_8 : f32 to vector<16x128xf32>
    %17 = arith.mulf %16, %15 : vector<16x128xf32>
    %18 = arith.mulf %5, %17 : vector<16x128xf32>
    %19 = arith.truncf %18 : vector<16x128xf32> to vector<16x128xbf16>
    %c0_9 = arith.constant 0 : index
    %c0_10 = arith.constant 0 : index
    %20 = vector.load %arg4[%c0_9, %c0_10] : memref<128x128xbf16, #tpu.memory_space<vmem>>, vector<128x128xbf16>
    %cst_11 = arith.constant dense<0.000000e+00> : vector<16x128xf32>
    %21 = tpu.matmul %19, %20, %cst_11 {dimension_numbers = #tpu.dot_dimension_numbers<[1], [0], [0], [1], [0, 0, 1, 1], [], []>} : vector<16x128xbf16>, vector<128x128xbf16>, vector<16x128xf32> -> vector<16x128xf32>
    %c0_12 = arith.constant 0 : index
    %c0_13 = arith.constant 0 : index
    %22 = vector.load %arg5[%c0_12, %c0_13] : memref<1x128xf32, #tpu.memory_space<vmem>>, vector<1x128xf32>
    %23 = vector.broadcast %22 : vector<1x128xf32> to vector<16x128xf32>
    %24 = arith.addf %21, %23 : vector<16x128xf32>
    %c0_14 = arith.constant 0 : index
    %c0_15 = arith.constant 0 : index
    %25 = vector.load %arg6[%c0_14, %c0_15] : memref<16x128xf32, #tpu.memory_space<vmem>>, vector<16x128xf32>
    tpu.vector_store %arg6[%c0_14, %c0_15], %24 {strides = array<i32>} : memref<16x128xf32, #tpu.memory_space<vmem>>, vector<16x128xf32>,
    return
  }
  func.func @transform_0(%arg0: i32) -> (i32, i32) {
    %c0_i32 = arith.constant 0 : i32
    %c0_i32_0 = arith.constant 0 : i32
    return %arg0, %c0_i32 : i32, i32
  }
  func.func @transform_1(%arg0: i32) -> (i32, i32) {
    %c0_i32 = arith.constant 0 : i32
    %c0_i32_0 = arith.constant 0 : i32
    %c0_i32_1 = arith.constant 0 : i32
    return %c0_i32, %c0_i32_0 : i32, i32
  }
  func.func @transform_2(%arg0: i32) -> (i32, i32) {
    %c0_i32 = arith.constant 0 : i32
    %c0_i32_0 = arith.constant 0 : i32
    %c0_i32_1 = arith.constant 0 : i32
    return %c0_i32, %c0_i32_0 : i32, i32
  }
  func.func @transform_3(%arg0: i32) -> (i32, i32) {
    %c0_i32 = arith.constant 0 : i32
    %c0_i32_0 = arith.constant 0 : i32
    %c0_i32_1 = arith.constant 0 : i32
    return %c0_i32, %c0_i32_0 : i32, i32
  }
  func.func @transform_4(%arg0: i32) -> (i32, i32) {
    %c0_i32 = arith.constant 0 : i32
    %c0_i32_0 = arith.constant 0 : i32
    %c0_i32_1 = arith.constant 0 : i32
    return %c0_i32, %c0_i32_0 : i32, i32
  }
  func.func @transform_5(%arg0: i32) -> (i32, i32) {
    %c0_i32 = arith.constant 0 : i32
    %c0_i32_0 = arith.constant 0 : i32
    return %arg0, %c0_i32 : i32, i32
  }
}

</mosaic_0001>

<bundles_post_ra>
// kernel: separable_latent_coder.1
= control target key start
LH: loop header
LB: loop body
LE: loop exit
PB: predicated region body
PF: predicated region fallthrough
CT: control target
= control target key end

     0   :  { %10 = vsyncpa [#allocation3], 0  ;;  %s535_s0 = inlined_call_operand.vmem [shape: bf16[16,128], index: 0, kind: input, shape index: {}]   ;;  %s536_s1 = inlined_call_operand.hbm [shape: bf16[128,128], index: 1, kind: input, shape index: {}]   ;;  %s537_s2 = inlined_call_operand.vmem [shape: f32[1,128], index: 2, kind: input, shape index: {}]   ;;  %s538_s3 = inlined_call_operand.hbm [shape: bf16[128,128], index: 3, kind: input, shape index: {}]   ;;  %s539_s4 = inlined_call_operand.vmem [shape: f32[1,128], index: 4, kind: input, shape index: {}]   ;;  %s540_s5 = inlined_call_operand.vmem [shape: f32[16,128], index: 5, kind: output, shape index: {}]  }
   0x1   :  { %11 = vsyncpa [#allocation5], 0  ;;  %s460_s18 = smov [#allocation2]   ;;  %s412_s22 = scalar_lea.hbm %s536_s1, 1024 }
   0x2   :  { %s19_s19 = sshll.u32 %s460_s18, 4  ;;  %p413_p0 = scmp.ne.s32.totalorder %s536_s1, %s412_s22  ;;  %s20_s19 = int_to_ptr.vmem [resolvable:$true] %s19_s19 }
   0x3   :  { %p416_p1 = scmp.lt.u32.totalorder %s412_s22, %s536_s1 }
   0x5   :  { %p418_p2 = pnand %p416_p1, %p413_p0 }
   0x7   :  { %421 = shalt.err (!%p418_p2)
}
   0x8   :  { %s422_s27 = scalar_lea.vmem %s20_s19, 1024  ;;  %p427_p4 = scmp.lt.s32.totalorder %s20_s19, %s20_s19 }
   0x9   :  { %p423_p3 = scmp.ne.s32.totalorder %s20_s19, %s422_s27  ;;  %p428_p5 = scmp.lt.s32.totalorder %s422_s27, %s422_s27 }
   0xb   :  { %p429_p6 = por %p428_p5, %p427_p4 }
   0xd   :  { %p430_p7 = pnand %p429_p6, %p423_p3 }
   0xf   :  { %433 = shalt.err (!%p430_p7)
}
  0x10   :  { %s461_s28 = smov 64   ;;  %s462_s29 = smov 4  }
  0x11   :  { %25 = dma.hbm_to_vmem [thread:$0]  %s536_s1, 1024, %s20_s19, [#allocation3], %s461_s28, %s461_s28, %s462_s29  }
  0x12   :  { %s463_s7 = smov [#allocation4]   ;;  %s434_s11 = scalar_lea.hbm %s538_s3, 1024 }
  0x13   :  { %s33_s8 = sshll.u32 %s463_s7, 4  ;;  %p435_p8 = scmp.ne.s32.totalorder %s538_s3, %s434_s11  ;;  %s34_s8 = int_to_ptr.vmem [resolvable:$true] %s33_s8 }
  0x14   :  { %p438_p9 = scmp.lt.u32.totalorder %s434_s11, %s538_s3 }
  0x16   :  { %p440_p10 = pnand %p438_p9, %p435_p8 }
  0x18   :  { %443 = shalt.err (!%p440_p10)
}
  0x19   :  { %s444_s16 = scalar_lea.vmem %s34_s8, 1024  ;;  %p449_p12 = scmp.lt.s32.totalorder %s34_s8, %s34_s8 }
  0x1a   :  { %p445_p11 = scmp.ne.s32.totalorder %s34_s8, %s444_s16  ;;  %p450_p13 = scmp.lt.s32.totalorder %s444_s16, %s444_s16 }
  0x1c   :  { %p451_p0 = por %p450_p13, %p449_p12 }
  0x1e   :  { %p452_p1 = pnand %p451_p0, %p445_p11 }
  0x20   :  { %455 = shalt.err (!%p452_p1)
}
  0x21   :  { %39 = dma.hbm_to_vmem [thread:$0]  %s538_s3, 1024, %s34_s8, [#allocation5], %s461_s28, %s461_s28, %s462_s29  }
  0x22   :  { %456 = dma.done.wait [#allocation3], 1024  }
  0x23   :  { %457 = vsyncadd [#allocation3], 4294966272 }
  0x24   :  { %458 = dma.done.wait [#allocation5], 1024  }
  0x25   :  { %459 = vsyncadd [#allocation5], 4294966272  ;;  %v464_v0 = vmov 0.0   ;;  %vm465_vm0 = vmmov 0   ;;  %v391_v1 = vld [vmem:[#allocation2] sm:$0xff]   ;;  %v392_v2 = vld [vmem:[#allocation2 + $0x8] sm:$0xff]  }
  0x26   :  { %345 = vmatprep.subr.bf16.mxu0 %v464_v0  ;;  %361 = vmatprep.mubr.msk.bf16.mxu0 %vm465_vm0, %v464_v0  ;;  %v393_v3 = vld [vmem:[#allocation2 + $0x10] sm:$0xff]   ;;  %v394_v4 = vld [vmem:[#allocation2 + $0x18] sm:$0xff]   ;;  %v395_v5 = vld [vmem:[#allocation2 + $0x20] sm:$0xff]  }
  0x27   :  { %365 = vmatprep.subr.bf16.mxu1 %v464_v0  ;;  %381 = vmatprep.mubr.msk.bf16.mxu1 %vm465_vm0, %v464_v0  ;;  %v396_v6 = vld [vmem:[#allocation2 + $0x28] sm:$0xff]   ;;  %v397_v7 = vld [vmem:[#allocation2 + $0x30] sm:$0xff]   ;;  %v398_v8 = vld [vmem:[#allocation2 + $0x38] sm:$0xff]  }
  0x28   :  { %346 = vmatpush3.bf16.msra.mxu0 %v391_v1  ;;  %v399_v9 = vld [vmem:[%s535_s0] sm:$0xff]   ;;  %v401_v11 = vld [vmem:[#allocation4 + $0x8] sm:$0xff]   ;;  %v402_v12 = vld [vmem:[#allocation4 + $0x10] sm:$0xff]  }
  0x29   :  { %347 = vmatprep.subr.bf16.mxu0 %v464_v0  ;;  %v400_v10 = vld [vmem:[#allocation4] sm:$0xff]   ;;  %v403_v13 = vld [vmem:[#allocation4 + $0x18] sm:$0xff]   ;;  %v405_v15 = vld [vmem:[#allocation4 + $0x28] sm:$0xff]  }
  0x2a   :  { %366 = vmatpush3.bf16.msra.mxu1 %v400_v10  ;;  %v404_v14 = vld [vmem:[#allocation4 + $0x20] sm:$0xff]   ;;  %v406_v16 = vld [vmem:[#allocation4 + $0x30] sm:$0xff]   ;;  %v407_v17 = vld [vmem:[#allocation4 + $0x38] sm:$0xff]  }
  0x2b   :  { %367 = vmatprep.subr.bf16.mxu1 %v464_v0  ;;  %v308_v18 = vld [vmem:[%s537_s2] ss:$0 sm:$0xff] }
  0x2c   :  { %348 = vmatpush3.bf16.msra.mxu0 %v392_v2  ;;  %v318_v44 = vld [vmem:[%s539_s4] ss:$0 sm:$0xff] }
  0x2d   :  { %349 = vmatprep.subr.bf16.mxu0 %v464_v0 }
  0x2e   :  { %368 = vmatpush3.bf16.msra.mxu1 %v401_v11 }
  0x2f   :  { %369 = vmatprep.subr.bf16.mxu1 %v464_v0 }
  0x30   :  { %350 = vmatpush3.bf16.msra.mxu0 %v393_v3 }
  0x31   :  { %351 = vmatprep.subr.bf16.mxu0 %v464_v0 }
  0x32   :  { %370 = vmatpush3.bf16.msra.mxu1 %v402_v12 }
  0x33   :  { %371 = vmatprep.subr.bf16.mxu1 %v464_v0 }
  0x34   :  { %352 = vmatpush3.bf16.msra.mxu0 %v394_v4 }
  0x35   :  { %353 = vmatprep.subr.bf16.mxu0 %v464_v0 }
  0x36   :  { %372 = vmatpush3.bf16.msra.mxu1 %v403_v13 }
  0x37   :  { %373 = vmatprep.subr.bf16.mxu1 %v464_v0 }
  0x38   :  { %354 = vmatpush3.bf16.msra.mxu0 %v395_v5 }
  0x39   :  { %355 = vmatprep.subr.bf16.mxu0 %v464_v0 }
  0x3a   :  { %374 = vmatpush3.bf16.msra.mxu1 %v404_v14 }
  0x3b   :  { %375 = vmatprep.subr.bf16.mxu1 %v464_v0 }
  0x3c   :  { %356 = vmatpush3.bf16.msra.mxu0 %v396_v6 }
  0x3d   :  { %357 = vmatprep.subr.bf16.mxu0 %v464_v0 }
  0x3e   :  { %376 = vmatpush3.bf16.msra.mxu1 %v405_v15 }
  0x3f   :  { %377 = vmatprep.subr.bf16.mxu1 %v464_v0 }
  0x40   :  { %358 = vmatpush3.bf16.msra.mxu0 %v397_v7 }
  0x41   :  { %359 = vmatprep.subr.bf16.mxu0 %v464_v0 }
  0x42   :  { %378 = vmatpush3.bf16.msra.mxu1 %v406_v16 }
  0x43   :  { %379 = vmatprep.subr.bf16.mxu1 %v464_v0 }
  0x44   :  { %360 = vmatpush3.bf16.msra.mxu0 %v398_v8 }
  0x46   :  { %380 = vmatpush3.bf16.msra.mxu1 %v407_v17 }
  0x47   :  { %362 = vmatmul.mubr.bf16.vlgmr.msra.gmra.mrb[0].mxu0 %v399_v9 }
 0x11a   :  { %v162_v19 = vpop.f32.mrb[0].mxu0 }
 0x11b   :  { %v163_v20 = vadd.f32 %v308_v18, %v162_v19  ;;  %v363_v21 = vpop.f32.mrb[1].mxu0 }
 0x11c   :  { %v165_v22 = vpop.f32.mrb[2].mxu0 }
 0x11d   :  { %v169_v23 = vmul.f32 %v163_v20, %v163_v20  ;;  %v166_v24 = vadd.f32 %v308_v18, %v165_v22  ;;  %v364_v25 = vpop.f32.mrb[3].mxu0 }
 0x11f   :  { %v171_v26 = vmul.f32 %v169_v23, %v163_v20  ;;  %v170_v27 = vmul.f32 %v166_v24, %v166_v24 }
 0x121   :  { %v173_v28 = vmul.f32 0.044715, %v171_v26  ;;  %v172_v29 = vmul.f32 %v170_v27, %v166_v24 }
 0x123   :  { %v175_v30 = vadd.f32 %v173_v28, %v163_v20  ;;  %v174_v31 = vmul.f32 0.044715, %v172_v29 }
 0x125   :  { %v177_v32 = vmul.f32 0.7978846, %v175_v30  ;;  %v176_v33 = vadd.f32 %v174_v31, %v166_v24 }
 0x127   :  { %408 = vtanh.f32 %v177_v32  ;;  %v178_v34 = vmul.f32 0.7978846, %v176_v33 }
 0x129   :  { %410 = vtanh.f32 %v178_v34 }
 0x131   :  { %v409_v35 = vpop.eup %408 }
 0x132   :  { %v181_v36 = vadd.f32 1.0, %v409_v35 }
 0x133   :  { %v411_v37 = vpop.eup %410 }
 0x134   :  { %v182_v38 = vadd.f32 1.0, %v411_v37  ;;  %v183_v39 = vmul.f32 0.5, %v181_v36 }
 0x136   :  { %v184_v40 = vmul.f32 0.5, %v182_v38  ;;  %v185_v41 = vmul.f32 %v183_v39, %v163_v20 }
 0x138   :  { %v186_v42 = vmul.f32 %v184_v40, %v166_v24 }
 0x13a   :  { %v187_v43 = vpack.c.bf16 %v186_v42, %v185_v41 }
 0x13c   :  { %382 = vmatmul.mubr.bf16.vlgmr.msra.gmra.mrb[0].mxu1 %v187_v43 }
 0x20f   :  { %v293_v45 = vpop.f32.mrb[0].mxu1 }
 0x210   :  { %v294_v46 = vadd.f32 %v318_v44, %v293_v45  ;;  %v383_v47 = vpop.f32.mrb[1].mxu1 }
 0x211   :  { %v296_v48 = vpop.f32.mrb[2].mxu1 }
 0x212   :  { %300 = vst [vmem:[%s540_s5] sm:$0xff] %v294_v46  ;;  %v297_v49 = vadd.f32 %v318_v44, %v296_v48  ;;  %v384_v50 = vpop.f32.mrb[3].mxu1 }
 0x214   :  { %301 = vst [vmem:[%s540_s5 + $0x8] sm:$0xff] %v297_v49 }
 0x215   :  { %306 = vsyncpa [#allocation3], 1 }
 0x216   :  { %307 = vsyncpa [#allocation5], 1 }

</bundles_post_ra>
